<compile_context>
chip_gen: v5e
topology: v5e:2x2
jax: 0.10.0
libtpu: 0.0.40
codegen_flags: <defaults>
</compile_context>

<pallas_src>
import functools

import jax
import jax.numpy as jnp
from jax import lax
from jax.experimental import pallas as pl
from jax.experimental.pallas import tpu as pltpu


# ----------------------------------------------------------------------------- kernels


def _kernel_standard(*refs, eps, has_residual):
    """Rows on sublanes, hidden on lanes (H already lane-friendly, or fold impossible)."""
    if has_residual:
        x_ref, r_ref, o_ref, w_ref, out_ref = refs
    else:
        x_ref, o_ref, w_ref, out_ref = refs

    x = x_ref[...].astype(jnp.float32)
    if has_residual:
        x = x + r_ref[...].astype(jnp.float32)

    ms = jnp.mean(x * x, axis=-1, keepdims=True) + eps           # (tm, 1) f32
    rms = jnp.sqrt(ms)
    w = w_ref[...].astype(jnp.float32)                           # (1, H)
    # Quirk reproduced: x/rms is discarded, x_norm := rms.
    xn = (rms * w).astype(out_ref.dtype)                         # (tm, H)

    o = o_ref[...]
    out_ref[...] = xn * (o * jax.nn.sigmoid(o))                  # swish gate


def _kernel_folded(*refs, eps, hidden, fold, has_residual):
    """`fold` logical rows packed into one lane-dense physical row of L = fold*hidden lanes.

    Per-logical-row mean(x^2) via two skinny MXU matmuls with exact 0/1 segment matrices
    built in-kernel (no HBM traffic, negligible MXU time, loads/stores stay lane-dense).
    """
    if has_residual:
        x_ref, r_ref, o_ref, w_ref, out_ref = refs
    else:
        x_ref, o_ref, w_ref, out_ref = refs

    L = hidden * fold
    x = x_ref[...].astype(jnp.float32)
    if has_residual:
        x = x + r_ref[...].astype(jnp.float32)

    # Exact 0/1 segment-membership matrices (compile-time pattern, tiny VPU work per step).
    seg_of_lane = lax.broadcasted_iota(jnp.int32, (L, fold), 0) // hidden
    col_id = lax.broadcasted_iota(jnp.int32, (L, fold), 1)
    seg_col = (seg_of_lane == col_id).astype(jnp.float32)        # (L, fold)

    row_id = lax.broadcasted_iota(jnp.int32, (fold, L), 0)
    seg_of_lane2 = lax.broadcasted_iota(jnp.int32, (fold, L), 1) // hidden
    seg_row = (row_id == seg_of_lane2).astype(jnp.float32)       # (fold, L)

    # Per-segment sum of squares -> per-segment rms -> broadcast back to L lanes.
    # Precision.HIGH is exact here (0/1 RHS is bf16-representable), at half of HIGHEST's passes.
    ssum = jnp.dot(x * x, seg_col, preferred_element_type=jnp.float32,
                   precision=lax.Precision.HIGH)                 # (tm, fold)
    rms_seg = jnp.sqrt(ssum * (1.0 / hidden) + eps)              # (tm, fold)
    rms = jnp.dot(rms_seg, seg_row, preferred_element_type=jnp.float32,
                  precision=lax.Precision.HIGH)                  # (tm, L)

    w = w_ref[...].astype(jnp.float32)                           # (1, L) = weight tiled fold x
    xn = (rms * w).astype(out_ref.dtype)                         # quirk: x/rms discarded

    o = o_ref[...]
    out_ref[...] = xn * (o * jax.nn.sigmoid(o))


# ----------------------------------------------------------------------------- tiling helpers


def _vmem_capacity_bytes():
    try:
        return int(pltpu.get_tpu_info().vmem_capacity_bytes)
    except Exception:
        return 64 * 1024 * 1024      # conservative: v7x per-TensorCore VMEM


def _choose_fold(n_rows, hidden, sub, max_lanes=512):
    """Largest fold k>1 such that k*hidden is a multiple of 128 (lane-dense), <= max_lanes,
    k divides the row count (the (N,H)->(N/k, k*H) reshape is a free row-major bitcast),
    and at least `sub` folded rows remain (tiny inputs stay on the simple path)."""
    if hidden % 128 == 0:
        return 1                    # already lane-dense
    best = 1
    k = 2
    while k * hidden <= max_lanes:
        if (k * hidden) % 128 == 0 and n_rows % k == 0 and (n_rows // k) >= sub:
            best = k
        k += 1
    return best


def _choose_row_tile(nrows, sub, io_row_bytes, f32_row_bytes, n_streams, vmem_cap):
    """Row-tile size: multiple of `sub`, ~4 MiB per stream per step, honest VMEM accounting
    (85% of physical, incl. double-buffered I/O and f32 temporaries), and >= 8 grid steps on
    non-trivial problems so the DMA pipeline and both v7x TensorCores stay busy."""
    usable = int(vmem_cap * 0.85)
    per_row = 2 * n_streams * io_row_bytes + 3 * f32_row_bytes   # dbl-buffered I/O + f32 temps
    tm_vmem = max(sub, (usable // per_row) // sub * sub)
    tm_bw = max(sub, ((4 << 20) // io_row_bytes) // sub * sub)   # ~4 MiB / stream / step
    min_steps = 8
    steps_cap = -(-nrows // min_steps)                           # ceil(nrows / 8)
    tm_steps = max(sub, -(-steps_cap // sub) * sub)              # rounded up to sublane tile
    tm = min(tm_vmem, tm_bw, tm_steps)
    if tm >= nrows:
        tm = nrows                  # single block == full array dims (always legal)
    return tm


# ----------------------------------------------------------------------------- wrapper


def fused_rmsnorm_swish_gate(x, o, weight, residual=None, eps=1e-5):
    """x, o, (residual): [..., H]; weight: [H]. Returns same shape/dtype as x."""
    orig_shape = x.shape
    dtype = x.dtype
    H = int(orig_shape[-1])
    N = int(x.size) // H
    eps = float(eps)

    if eps <= 0.0:
        # override_eps_zero path: x_norm = (x [+ residual]) * 0.0 * weight (keeps NaN/Inf
        # propagation of the reference).  No streaming kernel launched.
        xr = x + residual if residual is not None else x
        x_norm = (xr * 0.0) * jnp.asarray(weight)
        return (x_norm * (o * jax.nn.sigmoid(o))).astype(dtype)

    itemsize = jnp.dtype(dtype).itemsize
    sub = {4: 8, 2: 16, 1: 32}.get(itemsize, 8)

    # --- lane-dense folding for small hidden sizes (free row-major reshape) -------------
    # TODO(synk): if no fold divides N (e.g. odd N with H=32) we fall back to the masked
    # standard path rather than padding (padding would re-stream every tensor through HBM).
    k = _choose_fold(N, H, sub)
    L = k * H
    nrows = N // k

    x2 = x.reshape(nrows, L)
    o2 = o.reshape(nrows, L)
    r2 = residual.reshape(nrows, L) if residual is not None else None
    w_row = jnp.asarray(weight).reshape(1, H)
    w2 = jnp.tile(w_row, (1, k)) if k > 1 else w_row             # tiny (<=2KB), resident block

    has_res = residual is not None
    n_streams = 4 if has_res else 3                              # x, (residual), o, out

    cap = _vmem_capacity_bytes()
    io_row_bytes = L * itemsize
    f32_row_bytes = L * 4
    tm = _choose_row_tile(nrows, sub, io_row_bytes, f32_row_bytes, n_streams, cap)
    grid = (pl.cdiv(nrows, tm),)          # partial last block; OOB output writes are dropped

    # --- specs ---------------------------------------------------------------------------
    row_spec = pl.BlockSpec((tm, L), lambda i: (i, 0))
    w_spec = pl.BlockSpec((1, L), lambda i: (0, 0))              # same block -> stays resident

    if k > 1:
        kernel = functools.partial(_kernel_folded, eps=eps, hidden=H, fold=k,
                                   has_residual=has_res)
    else:
        kernel = functools.partial(_kernel_standard, eps=eps, has_residual=has_res)

    if has_res:
        args, in_specs = (x2, r2, o2, w2), [row_spec, row_spec, row_spec, w_spec]
    else:
        args, in_specs = (x2, o2, w2), [row_spec, row_spec, w_spec]

    # --- scoped-VMEM limit + cost estimate ------------------------------------------------
    vmem_limit = int(cap * 0.9)

    elems = N * H
    bytes_accessed = n_streams * elems * itemsize + L * jnp.dtype(w2.dtype).itemsize
    matmul_flops = 2 * 2 * nrows * L * k if k > 1 else 0
    cost = pl.CostEstimate(flops=int(10 * elems + matmul_flops),
                           transcendentals=int(elems),
                           bytes_accessed=int(bytes_accessed))

    out = pl.pallas_call(
        kernel,
        out_shape=jax.ShapeDtypeStruct((nrows, L), dtype),
        grid_spec=pltpu.PrefetchScalarGridSpec(
            num_scalar_prefetch=0,
            grid=grid,
            in_specs=in_specs,
            out_specs=row_spec,
        ),
        compiler_params=pltpu.CompilerParams(
            dimension_semantics=("parallel",),
            vmem_limit_bytes=vmem_limit,
        ),
        cost_estimate=cost,
    )(*args)

    return out.reshape(orig_shape)


# ----------------------------------------------------------------------------- reference


def _reference(x, o, weight, residual=None, eps=1e-5):
    # Pure-JAX mirror of the PyTorch forward (incl. the x_norm-overwrite quirk).
    if residual is not None:
        x = x + residual
    ms = jnp.mean(jnp.square(x), axis=-1, keepdims=True) + eps
    if eps > 0.0:
        rms = jnp.sqrt(ms)
        x_norm = rms * weight          # quirk: x/rms discarded, replaced by rms
    else:
        x_norm = x * 0.0 * weight
    gated_o = o * jax.nn.sigmoid(o)
    return x_norm * gated_o


# TODO(synk): CustomFakeQuantize / observer statistics paths (quant != None) are stateful
# host-side bookkeeping with no Pallas equivalent; this kernel implements the quant=None
# (identity) configuration used by default.

if __name__ == "__main__":
    key = jax.random.PRNGKey(0)
    k1, k2, k3 = jax.random.split(key, 3)

    batch, seq, hidden = 2, 8, 32
    x = jax.random.normal(k1, (batch, seq, hidden), dtype=jnp.float32)
    o = jax.random.normal(k2, (batch, seq, hidden), dtype=jnp.float32)
    residual = jax.random.normal(k3, (batch, seq, hidden), dtype=jnp.float32)
    weight = jnp.ones((hidden,), dtype=jnp.float32)   # nn.Parameter(torch.ones(hidden_size))

    # 1) with residual (tiny input -> standard path)
    out = jax.block_until_ready(fused_rmsnorm_swish_gate(x, o, weight, residual=residual, eps=1e-5))
    ref = _reference(x, o, weight, residual=residual, eps=1e-5)
    assert out.shape == x.shape and out.dtype == x.dtype
    assert jnp.allclose(out, ref, atol=1e-5, rtol=1e-5), "mismatch vs reference (residual)"

    # 2) without residual
    out2 = jax.block_until_ready(fused_rmsnorm_swish_gate(x, o, weight, eps=1e-5))
    ref2 = _reference(x, o, weight, eps=1e-5)
    assert jnp.allclose(out2, ref2, atol=1e-5, rtol=1e-5), "mismatch vs reference (no residual)"

    # 3) larger row count: lane-dense folded path (H=32 -> L=512, two skinny MXU matmuls)
    xb = jax.random.normal(k1, (2, 64, hidden), dtype=jnp.float32)
    ob = jax.random.normal(k2, (2, 64, hidden), dtype=jnp.float32)
    rb = jax.random.normal(k3, (2, 64, hidden), dtype=jnp.float32)
    out3 = jax.block_until_ready(fused_rmsnorm_swish_gate(xb, ob, weight, residual=rb, eps=1e-5))
    ref3 = _reference(xb, ob, weight, residual=rb, eps=1e-5)
    assert jnp.allclose(out3, ref3, atol=1e-4, rtol=1e-4), "mismatch vs reference (folded path)"

    # 4) ragged row count: folded path with multi-step grid and a PARTIAL last block
    xc = jax.random.normal(k1, (2, 300, hidden), dtype=jnp.float32)
    oc = jax.random.normal(k2, (2, 300, hidden), dtype=jnp.float32)
    rc = jax.random.normal(k3, (2, 300, hidden), dtype=jnp.float32)
    out4 = jax.block_until_ready(fused_rmsnorm_swish_gate(xc, oc, weight, residual=rc, eps=1e-5))
    ref4 = _reference(xc, oc, weight, residual=rc, eps=1e-5)
    assert jnp.allclose(out4, ref4, atol=1e-4, rtol=1e-4), "mismatch vs reference (partial block)"

    print("KERNEL_OK")
</pallas_src>

<mosaic_0001>
module attributes {stable_mosaic.version = 11 : i64} {
  func.func @_kernel_standard(%arg0: i32, %arg1: memref<8x32xf32, #tpu.memory_space<vmem>>, %arg2: memref<8x32xf32, #tpu.memory_space<vmem>>, %arg3: memref<8x32xf32, #tpu.memory_space<vmem>>, %arg4: memref<1x32xf32, #tpu.memory_space<vmem>>, %arg5: memref<8x32xf32, #tpu.memory_space<vmem>>) attributes {dimension_semantics = [#tpu.dimension_semantics<parallel>], iteration_bounds = array<i64: 2>, scalar_prefetch = 0 : i64, scratch_operands = 0 : i64, tpu.core_type = #tpu.core_type<tc>, window_params = [{transform_indices = @transform_0, window_bounds = array<i64: 8, 32>}, {transform_indices = @transform_1, window_bounds = array<i64: 8, 32>}, {transform_indices = @transform_2, window_bounds = array<i64: 8, 32>}, {pipeline_mode = #tpu.pipeline_mode<synchronous>, transform_indices = @transform_3, window_bounds = array<i64: 1, 32>}, {transform_indices = @transform_4, window_bounds = array<i64: 8, 32>}]} {
    %c0 = arith.constant 0 : index
    %c0_0 = arith.constant 0 : index
    %0 = vector.load %arg1[%c0, %c0_0] : memref<8x32xf32, #tpu.memory_space<vmem>>, vector<8x32xf32>
    %c0_1 = arith.constant 0 : index
    %c0_2 = arith.constant 0 : index
    %1 = vector.load %arg2[%c0_1, %c0_2] : memref<8x32xf32, #tpu.memory_space<vmem>>, vector<8x32xf32>
    %2 = arith.addf %0, %1 : vector<8x32xf32>
    %3 = arith.mulf %2, %2 : vector<8x32xf32>
    %cst = arith.constant dense<0.000000e+00> : vector<8xf32>
    %4 = vector.multi_reduction <add>, %3, %cst [1] : vector<8x32xf32> to vector<8xf32>
    %5 = vector.shape_cast %4 : vector<8xf32> to vector<8x1xf32>
    %cst_3 = arith.constant 3.200000e+01 : f32
    %6 = vector.broadcast %cst_3 : f32 to vector<8x1xf32>
    %7 = arith.divf %5, %6 : vector<8x1xf32>
    %cst_4 = arith.constant 9.99999974E-6 : f32
    %8 = vector.broadcast %cst_4 : f32 to vector<8x1xf32>
    %9 = arith.addf %7, %8 : vector<8x1xf32>
    %10 = math.sqrt %9 : vector<8x1xf32>
    %c0_5 = arith.constant 0 : index
    %c0_6 = arith.constant 0 : index
    %11 = vector.load %arg4[%c0_5, %c0_6] : memref<1x32xf32, #tpu.memory_space<vmem>>, vector<1x32xf32>
    %12 = vector.broadcast %10 : vector<8x1xf32> to vector<8x32xf32>
    %13 = vector.broadcast %11 : vector<1x32xf32> to vector<8x32xf32>
    %14 = arith.mulf %12, %13 : vector<8x32xf32>
    %c0_7 = arith.constant 0 : index
    %c0_8 = arith.constant 0 : index
    %15 = vector.load %arg3[%c0_7, %c0_8] : memref<8x32xf32, #tpu.memory_space<vmem>>, vector<8x32xf32>
    %16 = arith.negf %15 : vector<8x32xf32>
    %17 = math.exp %16 : vector<8x32xf32>
    %cst_9 = arith.constant 1.000000e+00 : f32
    %18 = vector.broadcast %cst_9 : f32 to vector<8x32xf32>
    %19 = arith.addf %18, %17 : vector<8x32xf32>
    %20 = arith.divf %18, %19 : vector<8x32xf32>
    %21 = arith.mulf %15, %20 : vector<8x32xf32>
    %22 = arith.mulf %14, %21 : vector<8x32xf32>
    %c0_10 = arith.constant 0 : index
    %c0_11 = arith.constant 0 : index
    %23 = vector.load %arg5[%c0_10, %c0_11] : memref<8x32xf32, #tpu.memory_space<vmem>>, vector<8x32xf32>
    tpu.vector_store %arg5[%c0_10, %c0_11], %22 {strides = array<i32>} : memref<8x32xf32, #tpu.memory_space<vmem>>, vector<8x32xf32>,
    return
  }
  func.func @transform_0(%arg0: i32) -> (i32, i32) {
    %c0_i32 = arith.constant 0 : i32
    %c0_i32_0 = arith.constant 0 : i32
    return %arg0, %c0_i32 : i32, i32
  }
  func.func @transform_1(%arg0: i32) -> (i32, i32) {
    %c0_i32 = arith.constant 0 : i32
    %c0_i32_0 = arith.constant 0 : i32
    return %arg0, %c0_i32 : i32, i32
  }
  func.func @transform_2(%arg0: i32) -> (i32, i32) {
    %c0_i32 = arith.constant 0 : i32
    %c0_i32_0 = arith.constant 0 : i32
    return %arg0, %c0_i32 : i32, i32
  }
  func.func @transform_3(%arg0: i32) -> (i32, i32) {
    %c0_i32 = arith.constant 0 : i32
    %c0_i32_0 = arith.constant 0 : i32
    %c0_i32_1 = arith.constant 0 : i32
    return %c0_i32, %c0_i32_0 : i32, i32
  }
  func.func @transform_4(%arg0: i32) -> (i32, i32) {
    %c0_i32 = arith.constant 0 : i32
    %c0_i32_0 = arith.constant 0 : i32
    return %arg0, %c0_i32 : i32, i32
  }
}

</mosaic_0001>

<bundles_post_ra>
// kernel: tpu_custom_call.1
= control target key start
LH: loop header
LB: loop body
LE: loop exit
PB: predicated region body
PF: predicated region fallthrough
CT: control target
= control target key end

     0   :  { %s940_s0 = inlined_call_operand.hbm [shape: f32[16,32], index: 0, kind: input, shape index: {}]   ;;  %s941_s1 = inlined_call_operand.hbm [shape: f32[16,32], index: 1, kind: input, shape index: {}]   ;;  %s942_s2 = inlined_call_operand.hbm [shape: f32[16,32], index: 2, kind: input, shape index: {}]   ;;  %s943_s3 = inlined_call_operand.vmem [shape: f32[1,32], index: 3, kind: input, shape index: {}]   ;;  %s944_s4 = inlined_call_operand.hbm [shape: f32[16,32], index: 4, kind: output, shape index: {}]  }
   0x1   :  { %946 = sst [smem:[#allocation14_spill]] %s941_s1 }
   0x2   :  { %9 = vsyncpa [#allocation3], 0 }
   0x3   :  { %11 = vsyncpa [#allocation3 + $0x1], 0 }
   0x4   :  { %12 = vsyncpa [#allocation6], 0 }
   0x5   :  { %14 = vsyncpa [#allocation6 + $0x1], 0 }
   0x6   :  { %15 = vsyncpa [#allocation4], 0 }
   0x7   :  { %17 = vsyncpa [#allocation4 + $0x1], 0  ;;  %s749_s15 = smov 0   ;;  %s751_s16 = smov 0  }
   0x8   :  { %s753_s17 = smov 0   ;;  %s755_s18 = smov 0  }
   0x9 LB: > { %947 = sst [smem:[#allocation12_spill]] %s717_s17  ;;  %s770_s19 = sadd.s32 4294967295, %s721_s18   ;;  %s721_s18 = sphi %s755_s18, %s959_s18   ;;  %s717_s17 = sphi %s753_s17, %s956_s17   ;;  %s713_s16 = sphi %s751_s16, %s958_s16   ;;  %s709_s15 = sphi %s749_s15, %s957_s15  }
   0xa   : > { %s476_s20 = sadd.s32 4294967294, %s721_s18   ;;  %s774_s21 = sadd.s32 1, %s721_s18  }
   0xb   : > { %s30_s22 = sadd.s32 1, %s717_s17  ;;  %s27_s23 = ssub.s32 %s721_s18, %s774_s21 }
   0xc   : > { %p37_p0 = scmp.ne.s32.totalorder %s717_s17, %s713_s16  ;;  %p28_p1 = scmp.eq.s32.totalorder %s27_s23, 0 }
   0xd   : > { %p38_p2 = scmp.eq.s32.totalorder %s721_s18, 0  ;;  %p43_p3 = scmp.ne.s32.totalorder %s713_s16, %s709_s15 }
   0xe   : > { %p44_p4 = scmp.eq.s32.totalorder %s770_s19, 0  ;;  %p140_p7 = scmp.eq.s32.totalorder %s770_s19, 1 }
   0xf   : > { %s786_s24 = scalar_select %p28_p1, %s717_s17, %s30_s22  }
  0x10   : > { %p39_p5 = por %p38_p2, %p37_p0  ;;  %p788_p6 = por %p44_p4, %p43_p3 }
  0x11   : > { %948 = sst [smem:[#allocation13_spill]] %s786_s24  ;;  %p146_p8 = scmp.eq.s32.totalorder %s476_s20, 1 }
  0x12   : > { %p478_p9 = scmp.ge.s32.totalorder %s721_s18, 2  ;;  %p517_p10 = scmp.lt.s32.totalorder %s721_s18, 2 }
  0x13   : > { %p795_p11 = por %p140_p7, %p37_p0  ;;  %p799_p12 = por %p146_p8, %p43_p3 }
  0x14   : > { %s169_s28 = sand.u32 1, %s717_s17   ;;  %s805_s29 = sshll.u32 %s721_s18, 3 }
  0x15   : > { %s809_s30 = sshll.u32 %s169_s28, 3  ;;  %p811_p13 = pnand %p517_p10, %p39_p5 }
  0x16   : > { %s188_s6 = sand.u32 1, %s721_s18   ;;  %s953_s1 = sld [smem:[#allocation14_spill]] }
  0x17   : > { %s192_s10 = scalar_lea.vmem [#allocation5], %s809_s30  ;;  %p485_p0 = scmp.ge.s32.totalorder %s721_s18, 1 }
  0x18   : > { %s200_s11 = sshll.u32 %s192_s10, 4  ;;  %s822_s13 = scalar_lea.sflag [#allocation6], %s188_s6  ;;  %s201_s11 = int_to_ptr.vmem [resolvable:$true] %s200_s11 }
  0x19   : > { %p565_p2 = pneg %p811_p13 }
  0x1c   : > { %s196_s9 = scalar_lea.hbm %s953_s1, %s805_s29  ;;  %s568_s7 = scalar_lea.hbm %s953_s1, 16 }
  0x1d   : > { %s198_s12 = sshll.u32 %s196_s9, 4  ;;  %s199_s12 = int_to_ptr.hbm [resolvable:$true] %s198_s12 }
  0x1e   : > { %s561_s14 = sshra.s32 %s199_s12, 4  ;;  %s562_s14 = int_to_ptr.hbm [resolvable:$true] %s561_s14 }
  0x1f   : > { %s563_s20 = scalar_lea.hbm %s562_s14, 8  ;;  %p569_p5 = scmp.lt.s32.totalorder %s562_s14, %s953_s1 }
  0x20   : > { %p564_p1 = scmp.ne.s32.totalorder %s562_s14, %s563_s20  ;;  %p570_p7 = scmp.lt.s32.totalorder %s568_s7, %s563_s20 }
  0x22   : > { %p566_p3 = pnand %p565_p2, %p564_p1  ;;  %p571_p8 = por %p570_p7, %p569_p5 }
  0x24   : > { %p567_p4 = pneg %p566_p3 }
  0x26   : > { %p572_p10 = pnand %p571_p8, %p567_p4 }
  0x28   : > { %575 = shalt.err (!%p572_p10)
}
  0x29   : > { %509 = dma.hbm_to_vmem [thread:$0]  (!%p811_p13), %s199_s12, 128, %s201_s11, %s822_s13  }
  0x2a   : > { %p224_p1 = scmp.lt.s32.totalorder %s721_s18, 3  ;;  %s177_s22 = scalar_lea.hbm %s940_s0, %s805_s29 }
  0x2b   : > { %s179_s20 = sshll.u32 %s177_s22, 4  ;;  %s173_s23 = scalar_lea.vmem [#allocation2], %s809_s30  ;;  %s180_s20 = int_to_ptr.hbm [resolvable:$true] %s179_s20 }
  0x2c   : > { %p845_p3 = pnand %p485_p0, %p224_p1  ;;  %s181_s7 = sshll.u32 %s173_s23, 4  ;;  %s182_s7 = int_to_ptr.vmem [resolvable:$true] %s181_s7 }
  0x2d   : > { %s170_s8 = scalar_lea.sflag [#allocation3], %s169_s28  ;;  %s591_s9 = sshra.s32 %s180_s20, 4  ;;  %s592_s9 = int_to_ptr.hbm [resolvable:$true] %s591_s9 }
  0x2e   : > { %s593_s11 = scalar_lea.hbm %s592_s9, 8  ;;  %s598_s10 = scalar_lea.hbm %s940_s0, 16 }
  0x2f   : > { %p594_p4 = scmp.ne.s32.totalorder %s592_s9, %s593_s11  ;;  %p599_p0 = scmp.lt.s32.totalorder %s592_s9, %s940_s0 }
  0x30   : > { %p600_p8 = scmp.lt.s32.totalorder %s598_s10, %s593_s11 }
  0x31   : > { %p596_p5 = pnand %p594_p4, %p565_p2 }
  0x32   : > { %p601_p10 = por %p600_p8, %p599_p0 }
  0x33   : > { %p597_p7 = pneg %p596_p5 }
  0x35   : > { %p602_p1 = pnand %p601_p10, %p597_p7 }
  0x37   : > { %605 = shalt.err (!%p602_p1)
}
  0x38   : > { %506 = dma.hbm_to_vmem [thread:$0]  (!%p811_p13), %s180_s20, 128, %s182_s7, %s170_s8  }
  0x39   : > { %s215_s24 = scalar_lea.hbm %s942_s2, %s805_s29  ;;  %s211_s12 = scalar_lea.vmem [#allocation7], %s809_s30 }
  0x3a   : > { %s219_s6 = sshll.u32 %s211_s12, 4  ;;  %s217_s17 = sshll.u32 %s215_s24, 4  ;;  %s220_s6 = int_to_ptr.vmem [resolvable:$true] %s219_s6  ;;  %s218_s17 = int_to_ptr.hbm [resolvable:$true] %s217_s17 }
  0x3b   : > { %s621_s1 = sshra.s32 %s218_s17, 4  ;;  %s628_s20 = scalar_lea.hbm %s942_s2, 16  ;;  %s622_s1 = int_to_ptr.hbm [resolvable:$true] %s621_s1 }
  0x3c   : > { %s623_s9 = scalar_lea.hbm %s622_s1, 8  ;;  %p629_p0 = scmp.lt.s32.totalorder %s622_s1, %s942_s2 }
  0x3d   : > { %p624_p4 = scmp.ne.s32.totalorder %s622_s1, %s623_s9  ;;  %p630_p8 = scmp.lt.s32.totalorder %s628_s20, %s623_s9 }
  0x3f   : > { %p626_p5 = pnand %p624_p4, %p565_p2  ;;  %p631_p10 = por %p630_p8, %p629_p0 }
  0x41   : > { %p627_p7 = pneg %p626_p5 }
  0x43   : > { %p632_p1 = pnand %p631_p10, %p627_p7 }
  0x45   : > { %635 = shalt.err (!%p632_p1)
}
  0x46   : > { %512 = dma.hbm_to_vmem [thread:$0]  (!%p811_p13), %s218_s17, 128, %s220_s6, %s822_s13  }
  0x47   : > { %228 = sbr.rel (%p845_p3) target bundleno = 234 (0xea), region = 36  ;;  %s883_s24 = sand.u32 (!%p845_p3), 1, %s713_s16  }
  0x48   : > { %s886_s29 = sshll.u32 (!%p845_p3), %s883_s24, 3  ;;  %s231_s30 = scalar_lea.sflag (!%p845_p3), [#allocation3], %s883_s24 }
  0x49   : > { %s234_s22 = scalar_lea.vmem (!%p845_p3), [#allocation2], %s886_s29 }
  0x4c   : > { %696 = dma.done.wait (%p788_p6), %s231_s30, 128  }
  0x4d   : > { %698 = vsyncadd (%p788_p6), %s231_s30, 4294967168  ;;  %s240_s17 = sand.u32 1, %s770_s19   ;;  %s244_s13 = scalar_lea.vmem [#allocation5], %s886_s29 }
  0x4e   : > { %s241_s5 = scalar_lea.sflag [#allocation6], %s240_s17 }
  0x4f   : > { %700 = dma.done.wait (%p788_p6), %s241_s5, 256  }
  0x50   : > { %702 = vsyncadd (%p788_p6), %s241_s5, 4294967040  ;;  %v290_v0 = vld [vmem:[%s234_s22] sm:$0xff]  ;;  %v291_v1 = vld [vmem:[%s244_s13] sm:$0xff]  ;;  %vm294_vm0 = vcmask 261120   ;;  %v723_v5 = vmov 32.0   ;;  %s254_s14 = scalar_lea.vmem [#allocation7], %s886_s29 }
  0x51   : > { %v292_v2 = vadd.f32 %v291_v1, %v290_v0  ;;  %553 = vrcp.f32 %v723_v5  ;;  %v324_v6 = vld [vmem:[%s254_s14] sm:$0xff]  ;;  %s492_s25 = sshll.u32 %s770_s19, 3  ;;  %s289_s19 = scalar_lea.vmem [#allocation8], %s886_s29 }
  0x52   : > { %v490_v7 = vmul.f32 -1.442695, %v324_v6  ;;  %v552_v36 = vld [vmem:[%s943_s3] ss:$0 sm:$0xff]  ;;  %s358_s1 = scalar_lea.hbm %s944_s4, %s492_s25  ;;  %s360_s9 = sshll.u32 %s289_s19, 4  ;;  %s361_s9 = int_to_ptr.vmem [resolvable:$true] %s360_s9 }
  0x53   : > { %v293_v3 = vmul.f32 %v292_v2, %v292_v2  ;;  %s362_s11 = sshll.u32 %s358_s1, 4  ;;  %s348_s10 = scalar_lea.sflag [#allocation4], %s883_s24  ;;  %s363_s11 = int_to_ptr.hbm [resolvable:$true] %s362_s11 }
  0x54   : > { %555 = vpow2.f32 %v490_v7  ;;  %s665_s20 = sshra.s32 %s363_s11, 4  ;;  %s671_s29 = scalar_lea.hbm %s944_s4, 16  ;;  %s666_s20 = int_to_ptr.hbm [resolvable:$true] %s665_s20 }
  0x55   : > { %v295_v4 = vsel %vm294_vm0, %v293_v3, 0.0  ;;  %s667_s7 = scalar_lea.hbm %s666_s20, 8  ;;  %p672_p3 = scmp.lt.s32.totalorder %s666_s20, %s944_s4 }
  0x56   : > { %296 = vadd.xlane.f32.xlu0 %v295_v4  ;;  %p668_p6 = scmp.ne.s32.totalorder %s666_s20, %s667_s7  ;;  %p673_p4 = scmp.lt.s32.totalorder %s671_s29, %s667_s7 }
  0x57   : > { %v554_v8 = vpop.eup %553 }
  0x58   : > { %v299_v9 = vmul.f32 32.0, %v554_v8  ;;  %vm303_vm1 = vweird.f32 %v554_v8  ;;  %p669_p13 = pnand %p668_p6, %p795_p11  ;;  %p674_p5 = por %p673_p4, %p672_p3 }
  0x5a   : > { %v556_v10 = vpop.eup %555  ;;  %v300_v11 = vsub.f32 1.0, %v299_v9  ;;  %p670_p2 = pneg %p669_p13 }
  0x5b   : > { %v328_v12 = vadd.f32 1.0, %v556_v10 }
  0x5c   : > { %v301_v13 = vmul.f32 %v554_v8, %v300_v11  ;;  %p675_p7 = pnand %p674_p5, %p670_p2 }
  0x5d   : > { %557 = vrcp.f32 %v328_v12  ;;  %vm334_vm2 = vweird.f32 %v328_v12  ;;  %v340_v25 = vand.u32 2147483648, %v328_v12  ;;  %v338_v28 = vand.u32 2147483647, %v328_v12 }
  0x5e   : > { %v302_v14 = vadd.f32 %v554_v8, %v301_v13 }
  0x5f   : > { %v341_v30 = vor.u32 1.1754944e-38, %v340_v25  ;;  %vm339_vm5 = vcmp.eq.f32.partialorder %v338_v28, 8.507059e+37 }
  0x60   : > { %v304_v15 = vsel %vm303_vm1, %v554_v8, %v302_v14 }
  0x63   : > { %v558_v16 = vpop.eup %557 }
  0x64   : > { %v330_v19 = vmul.f32 %v558_v16, %v328_v12  ;;  %vm335_vm3 = vweird.f32 %v558_v16 }
  0x65   : > { %vm336_vm4 = vmor %vm334_vm2, %vm335_vm3 }
  0x66   : > { %v331_v21 = vsub.f32 1.0, %v330_v19 }
  0x68   : > { %v332_v22 = vmul.f32 %v558_v16, %v331_v21 }
  0x6a   : > { %v333_v27 = vadd.f32 %v558_v16, %v332_v22 }
  0x6c   : > { %v337_v32 = vsel %vm336_vm4, %v558_v16, %v333_v27 }
  0x6d   : > { %v342_v34 = vsel %vm339_vm5, %v341_v30, %v337_v32 }
  0x6e   : > { %v344_v39 = vmul.f32 %v342_v34, %v324_v6 }
  0xc9   : > { %v297_v17 = vpop.xlane.xlu0 %296 }
  0xca   : > { %v305_v18 = vmul.f32 %v304_v15, %v297_v17 }
  0xcc   : > { %v306_v20 = vadd.f32 1e-05, %v305_v18 }
  0xce   : > { %559 = vrsqrt.f32 %v306_v20  ;;  %vm314_vm6 = vcmp.eq.f32.partialorder %v306_v20, inf  ;;  %v317_v37 = vand.u32 2147483648, %v306_v20  ;;  %vm316_vm7 = vcmp.eq.f32.partialorder %v306_v20, 0.0 }
  0xd4   : > { %v560_v23 = vpop.eup %559 }
  0xd5   : > { %v308_v24 = vmul.f32 %v560_v23, %v306_v20 }
  0xd7   : > { %v309_v26 = vmul.f32 %v560_v23, %v308_v24 }
  0xd9   : > { %v310_v29 = vmul.f32 0.5, %v309_v26 }
  0xdb   : > { %v311_v31 = vsub.f32 1.5, %v310_v29 }
  0xdd   : > { %v312_v33 = vmul.f32 %v560_v23, %v311_v31 }
  0xdf   : > { %v313_v35 = vmul.f32 %v312_v33, %v306_v20 }
  0xe1   : > { %v315_v38 = vsel %vm314_vm6, %v306_v20, %v313_v35 }
  0xe2   : > { %v318_v40 = vsel %vm316_vm7, %v317_v37, %v315_v38 }
  0xe3   : > { %v323_v41 = vmul.f32 %v552_v36, %v318_v40 }
  0xe5   : > { %v345_v42 = vmul.f32 %v344_v39, %v323_v41 }
  0xe7   : > { %346 = vst.msk [vmem:[%s289_s19] sm:$0xff] %vm294_vm0, %v345_v42 }
  0xe8   : > { %678 = shalt.err (!%p675_p7)
}
  0xe9   : > { %501 = dma.vmem_to_hbm [thread:$0]  (%p795_p11), %s361_s9, 128, %s363_s11, %s348_s10  }
  0xea PF: > { %s374_s24 = sand.u32 1, %s709_s15   ;;  %p514_p0 = pnand %p478_p9, %p799_p12 }
  0xeb   : > { %s375_s5 = scalar_lea.sflag [#allocation4], %s374_s24 }
  0xec   : > { %p515_p8 = pneg %p514_p0 }
  0xee   : > { %704 = dma.done.wait (%p515_p8), %s375_s5, 128  }
  0xef   : > { %706 = vsyncadd (%p515_p8), %s375_s5, 4294967168  ;;  %s955_s13 = sld [smem:[#allocation12_spill]]  ;;  %p20_p10 = scmp.ge.s32.totalorder %s774_s21, 4  }
  0xf0   : > { %s956_s17 = sld [smem:[#allocation13_spill]]  ;;  %s957_s15 = smov %s713_s16 }
  0xf1   : > { %s959_s18 = smov %s774_s21  ;;  %22 = sbr.rel (!%p20_p10) target bundleno = 9 (0x9), region = 105 }
  0xf5   : > { %s958_s16 = smov %s955_s13 }
  0xf6   :  { %381 = vsyncpa [#allocation3], 1 }
  0xf7   :  { %383 = vsyncpa [#allocation3 + $0x1], 1 }
  0xf8   :  { %384 = vsyncpa [#allocation6], 1 }
  0xf9   :  { %386 = vsyncpa [#allocation6 + $0x1], 1 }
  0xfa   :  { %387 = vsyncpa [#allocation4], 1 }
  0xfb   :  { %389 = vsyncpa [#allocation4 + $0x1], 1 }

</bundles_post_ra>
